<compile_context>
chip_gen: v7x
topology: tpu7x:2x2x1
jax: 0.10.0
libtpu: 0.0.40
codegen_flags: <defaults>
</compile_context>

<pallas_src>
import functools

import jax
import jax.numpy as jnp
from jax.experimental import pallas as pl
from jax.experimental.pallas import tpu as pltpu

HIDDEN = 256  # fixed by the module: Linear(noise_dim, 256)


def _round_up(x, m):
    return ((x + m - 1) // m) * m


def generator_kernel(x_ref, w1_ref, b1_ref, w2_ref, b2_ref, o_ref):
    # x_ref : [TILE_B, noise_dim] f32   (pipelined per grid step)
    # w1_ref: [noise_dim, 256]   bf16   b1_ref: [1, 256]     f32   (resident)
    # w2_ref: [256, img_pad]     bf16   b2_ref: [1, img_pad] f32   (resident)
    # o_ref : [TILE_B, img_pad]  f32    (lane-dense output tile)
    x = x_ref[...].astype(jnp.bfloat16)

    # Linear(noise_dim -> 256): bf16 MXU operands, f32 accumulation.
    h = jnp.dot(x, w1_ref[...], preferred_element_type=jnp.float32) + b1_ref[...]

    # LeakyReLU(negative_slope=0.01) on the VPU (f32).
    h = jnp.where(h > 0, h, 0.01 * h)

    # Linear(256 -> img_dim): bf16 MXU operands, f32 accumulation.
    z = (jnp.dot(h.astype(jnp.bfloat16), w2_ref[...],
                 preferred_element_type=jnp.float32) + b2_ref[...])

    # Tanh on the EUP; output stored f32 (matches PyTorch semantics).
    o_ref[...] = jnp.tanh(z).astype(o_ref.dtype)


def generator_forward(x, w1, b1, w2, b2, *, max_tile_b=1024,
                      vmem_budget_bytes=24 << 20):
    B, noise_dim = x.shape
    hidden, img_dim = w2.shape
    assert w1.shape == (noise_dim, hidden)

    # Lane-pad the output features to a multiple of 128 -> unmasked vst stores.
    # (No-op for img_dim % 128 == 0; zero-padded columns give tanh(0) = 0.)
    img_pad = _round_up(img_dim, 128)
    if img_pad != img_dim:
        w2 = jnp.pad(w2, ((0, 0), (0, img_pad - img_dim)))
        b2 = jnp.pad(b2.reshape(1, -1), ((0, 0), (0, img_pad - img_dim)))

    # bf16 MXU operands (cast once, stays resident in VMEM as bf16).
    w1_bf = w1.astype(jnp.bfloat16)
    w2_bf = w2.astype(jnp.bfloat16)
    b1 = b1.reshape(1, hidden).astype(jnp.float32)
    b2 = b2.reshape(1, img_pad).astype(jnp.float32)

    # ---- derive tile_b from the VMEM budget (v7x-safe, larger on v5e/v6e) ----
    resident = (noise_dim * hidden * 2 + hidden * 4        # w1 (bf16) + b1
                + hidden * img_pad * 2 + img_pad * 4)      # w2 (bf16) + b2
    per_row = (2 * noise_dim * 4                           # double-buffered x tile
               + 2 * img_pad * 4                           # double-buffered out tile
               + img_pad * 4 + hidden * 4)                 # fused intermediates headroom
    tile_b = max((vmem_budget_bytes - resident) // per_row, 8)
    tile_b = (tile_b // 8) * 8
    tile_b = min(tile_b, max_tile_b)
    if B > 8:
        # At least 2 grid steps so ("parallel",) can use both TCs on v7x.
        tile_b = min(tile_b, _round_up(pl.cdiv(B, 2), 8))
    tile_b = max(min(tile_b, _round_up(B, 8)), 8)

    # No padding of the batch: Pallas masks the partial last block's writes.
    n_blocks = pl.cdiv(B, tile_b)

    vmem_limit = int(min(max(2 * (resident + tile_b * per_row), 32 << 20),
                         48 << 20))

    def _call(single_buffer_weights):
        if single_buffer_weights:
            # Constant index_map -> a single VMEM buffer is enough.
            res_spec = functools.partial(
                pl.BlockSpec, pipeline_mode=pl.Buffered(1))
        else:
            res_spec = pl.BlockSpec
        return pl.pallas_call(
            generator_kernel,
            out_shape=jax.ShapeDtypeStruct((B, img_pad), jnp.float32),
            grid=(n_blocks,),
            in_specs=[
                pl.BlockSpec((tile_b, noise_dim), lambda i: (i, 0)),  # x: batch-tiled
                res_spec((noise_dim, hidden), lambda i: (0, 0)),      # w1: resident
                res_spec((1, hidden), lambda i: (0, 0)),              # b1: resident
                res_spec((hidden, img_pad), lambda i: (0, 0)),        # w2: resident
                res_spec((1, img_pad), lambda i: (0, 0)),             # b2: resident
            ],
            out_specs=pl.BlockSpec((tile_b, img_pad), lambda i: (i, 0)),
            compiler_params=pltpu.CompilerParams(
                dimension_semantics=("parallel",),
                vmem_limit_bytes=vmem_limit),
        )(x, w1_bf, b1, w2_bf, b2)

    try:
        out = _call(True)
    except Exception:
        # pipeline_mode / Buffered(1) not supported on this jax version:
        # fall back to default double-buffered resident weights.
        out = _call(False)

    if img_pad != img_dim:
        out = out[:, :img_dim]
    return out


def init_params(key, noise_dim, img_dim, hidden=HIDDEN):
    """Deterministic PyTorch-style init: U(-1/sqrt(fan_in), 1/sqrt(fan_in))."""
    k1, k2, k3, k4 = jax.random.split(key, 4)
    bound1 = 1.0 / jnp.sqrt(jnp.float32(noise_dim))
    bound2 = 1.0 / jnp.sqrt(jnp.float32(hidden))
    w1 = jax.random.uniform(k1, (noise_dim, hidden), jnp.float32, -bound1, bound1)
    b1 = jax.random.uniform(k2, (1, hidden), jnp.float32, -bound1, bound1)
    w2 = jax.random.uniform(k3, (hidden, img_dim), jnp.float32, -bound2, bound2)
    b2 = jax.random.uniform(k4, (1, img_dim), jnp.float32, -bound2, bound2)
    return w1, b1, w2, b2


if __name__ == "__main__":
    key = jax.random.PRNGKey(0)
    kx, kp = jax.random.split(key)

    # Small shapes consistent with the module: noise vector -> flattened image.
    B, NOISE_DIM, IMG_DIM = 16, 64, 256
    x = jax.random.normal(kx, (B, NOISE_DIM), jnp.float32)
    w1, b1, w2, b2 = init_params(kp, NOISE_DIM, IMG_DIM)

    out = generator_forward(x, w1, b1, w2, b2)
    out = jax.block_until_ready(out)
    assert out.shape == (B, IMG_DIM)

    # Reference with the same bf16-operand / f32-accumulate math as the kernel.
    h_bf = jnp.dot(x.astype(jnp.bfloat16), w1.astype(jnp.bfloat16),
                   preferred_element_type=jnp.float32) + b1
    h_bf = jnp.where(h_bf > 0, h_bf, 0.01 * h_bf)
    ref_bf = jnp.tanh(jnp.dot(h_bf.astype(jnp.bfloat16), w2.astype(jnp.bfloat16),
                              preferred_element_type=jnp.float32) + b2)
    assert jnp.allclose(out, ref_bf, atol=2e-3, rtol=2e-3), \
        float(jnp.max(jnp.abs(out - ref_bf)))

    # Also stay close to the exact f32 PyTorch math (bf16 matmul error only).
    h32 = x @ w1 + b1
    h32 = jnp.where(h32 > 0, h32, 0.01 * h32)
    ref32 = jnp.tanh(h32 @ w2 + b2)
    assert jnp.allclose(out, ref32, atol=5e-2), \
        float(jnp.max(jnp.abs(out - ref32)))

    print("KERNEL_OK")
</pallas_src>

<mosaic_0001>
module attributes {stable_mosaic.version = 11 : i64} {
  func.func @generator_kernel(%arg0: i32, %arg1: memref<8x64xf32, #tpu.memory_space<vmem>>, %arg2: memref<64x256xbf16, #tpu.memory_space<vmem>>, %arg3: memref<1x256xf32, #tpu.memory_space<vmem>>, %arg4: memref<256x256xbf16, #tpu.memory_space<vmem>>, %arg5: memref<1x256xf32, #tpu.memory_space<vmem>>, %arg6: memref<8x256xf32, #tpu.memory_space<vmem>>) attributes {dimension_semantics = [#tpu.dimension_semantics<parallel>], iteration_bounds = array<i64: 2>, scalar_prefetch = 0 : i64, scratch_operands = 0 : i64, tpu.core_type = #tpu.core_type<tc>, window_params = [{transform_indices = @transform_0, window_bounds = array<i64: 8, 64>}, {pipeline_mode = #tpu.pipeline_mode<synchronous>, transform_indices = @transform_1, window_bounds = array<i64: 64, 256>}, {pipeline_mode = #tpu.pipeline_mode<synchronous>, transform_indices = @transform_2, window_bounds = array<i64: 1, 256>}, {pipeline_mode = #tpu.pipeline_mode<synchronous>, transform_indices = @transform_3, window_bounds = array<i64: 256, 256>}, {pipeline_mode = #tpu.pipeline_mode<synchronous>, transform_indices = @transform_4, window_bounds = array<i64: 1, 256>}, {transform_indices = @transform_5, window_bounds = array<i64: 8, 256>}]} {
    %c0 = arith.constant 0 : index
    %c0_0 = arith.constant 0 : index
    %0 = vector.load %arg1[%c0, %c0_0] : memref<8x64xf32, #tpu.memory_space<vmem>>, vector<8x64xf32>
    %1 = arith.truncf %0 : vector<8x64xf32> to vector<8x64xbf16>
    %c0_1 = arith.constant 0 : index
    %c0_2 = arith.constant 0 : index
    %2 = vector.load %arg2[%c0_1, %c0_2] : memref<64x256xbf16, #tpu.memory_space<vmem>>, vector<64x256xbf16>
    %cst = arith.constant dense<0.000000e+00> : vector<8x256xf32>
    %3 = tpu.matmul %1, %2, %cst {dimension_numbers = #tpu.dot_dimension_numbers<[1], [0], [0], [1], [0, 0, 1, 1], [], []>} : vector<8x64xbf16>, vector<64x256xbf16>, vector<8x256xf32> -> vector<8x256xf32>
    %c0_3 = arith.constant 0 : index
    %c0_4 = arith.constant 0 : index
    %4 = vector.load %arg3[%c0_3, %c0_4] : memref<1x256xf32, #tpu.memory_space<vmem>>, vector<1x256xf32>
    %5 = vector.broadcast %4 : vector<1x256xf32> to vector<8x256xf32>
    %6 = arith.addf %3, %5 : vector<8x256xf32>
    %cst_5 = arith.constant 0.000000e+00 : f32
    %7 = vector.broadcast %cst_5 : f32 to vector<8x256xf32>
    %8 = arith.cmpf ogt, %6, %7 : vector<8x256xf32>
    %cst_6 = arith.constant 0.00999999977 : f32
    %9 = vector.broadcast %cst_6 : f32 to vector<8x256xf32>
    %10 = arith.mulf %9, %6 : vector<8x256xf32>
    %11 = arith.select %8, %6, %10 : vector<8x256xi1>, vector<8x256xf32>
    %12 = arith.truncf %11 : vector<8x256xf32> to vector<8x256xbf16>
    %c0_7 = arith.constant 0 : index
    %c0_8 = arith.constant 0 : index
    %13 = vector.load %arg4[%c0_7, %c0_8] : memref<256x256xbf16, #tpu.memory_space<vmem>>, vector<256x256xbf16>
    %cst_9 = arith.constant dense<0.000000e+00> : vector<8x256xf32>
    %14 = tpu.matmul %12, %13, %cst_9 {dimension_numbers = #tpu.dot_dimension_numbers<[1], [0], [0], [1], [0, 0, 1, 1], [], []>} : vector<8x256xbf16>, vector<256x256xbf16>, vector<8x256xf32> -> vector<8x256xf32>
    %c0_10 = arith.constant 0 : index
    %c0_11 = arith.constant 0 : index
    %15 = vector.load %arg5[%c0_10, %c0_11] : memref<1x256xf32, #tpu.memory_space<vmem>>, vector<1x256xf32>
    %16 = vector.broadcast %15 : vector<1x256xf32> to vector<8x256xf32>
    %17 = arith.addf %14, %16 : vector<8x256xf32>
    %18 = math.tanh %17 : vector<8x256xf32>
    %c0_12 = arith.constant 0 : index
    %c0_13 = arith.constant 0 : index
    %19 = vector.load %arg6[%c0_12, %c0_13] : memref<8x256xf32, #tpu.memory_space<vmem>>, vector<8x256xf32>
    tpu.vector_store %arg6[%c0_12, %c0_13], %18 {strides = array<i32>} : memref<8x256xf32, #tpu.memory_space<vmem>>, vector<8x256xf32>,
    return
  }
  func.func @transform_0(%arg0: i32) -> (i32, i32) {
    %c0_i32 = arith.constant 0 : i32
    %c0_i32_0 = arith.constant 0 : i32
    return %arg0, %c0_i32 : i32, i32
  }
  func.func @transform_1(%arg0: i32) -> (i32, i32) {
    %c0_i32 = arith.constant 0 : i32
    %c0_i32_0 = arith.constant 0 : i32
    %c0_i32_1 = arith.constant 0 : i32
    return %c0_i32, %c0_i32_0 : i32, i32
  }
  func.func @transform_2(%arg0: i32) -> (i32, i32) {
    %c0_i32 = arith.constant 0 : i32
    %c0_i32_0 = arith.constant 0 : i32
    %c0_i32_1 = arith.constant 0 : i32
    return %c0_i32, %c0_i32_0 : i32, i32
  }
  func.func @transform_3(%arg0: i32) -> (i32, i32) {
    %c0_i32 = arith.constant 0 : i32
    %c0_i32_0 = arith.constant 0 : i32
    %c0_i32_1 = arith.constant 0 : i32
    return %c0_i32, %c0_i32_0 : i32, i32
  }
  func.func @transform_4(%arg0: i32) -> (i32, i32) {
    %c0_i32 = arith.constant 0 : i32
    %c0_i32_0 = arith.constant 0 : i32
    %c0_i32_1 = arith.constant 0 : i32
    return %c0_i32, %c0_i32_0 : i32, i32
  }
  func.func @transform_5(%arg0: i32) -> (i32, i32) {
    %c0_i32 = arith.constant 0 : i32
    %c0_i32_0 = arith.constant 0 : i32
    return %arg0, %c0_i32 : i32, i32
  }
}

module attributes {stable_mosaic.version = 11 : i64} {
  func.func @generator_kernel(%arg0: i32, %arg1: memref<8x64xf32, #tpu.memory_space<vmem>>, %arg2: memref<64x256xbf16, #tpu.memory_space<vmem>>, %arg3: memref<1x256xf32, #tpu.memory_space<vmem>>, %arg4: memref<256x256xbf16, #tpu.memory_space<vmem>>, %arg5: memref<1x256xf32, #tpu.memory_space<vmem>>, %arg6: memref<8x256xf32, #tpu.memory_space<vmem>>) attributes {dimension_semantics = [#tpu.dimension_semantics<parallel>], iteration_bounds = array<i64: 2>, scalar_prefetch = 0 : i64, scratch_operands = 0 : i64, tpu.core_type = #tpu.core_type<tc>, window_params = [{transform_indices = @transform_0, window_bounds = array<i64: 8, 64>}, {pipeline_mode = #tpu.pipeline_mode<synchronous>, transform_indices = @transform_1, window_bounds = array<i64: 64, 256>}, {pipeline_mode = #tpu.pipeline_mode<synchronous>, transform_indices = @transform_2, window_bounds = array<i64: 1, 256>}, {pipeline_mode = #tpu.pipeline_mode<synchronous>, transform_indices = @transform_3, window_bounds = array<i64: 256, 256>}, {pipeline_mode = #tpu.pipeline_mode<synchronous>, transform_indices = @transform_4, window_bounds = array<i64: 1, 256>}, {transform_indices = @transform_5, window_bounds = array<i64: 8, 256>}]} {
    %c0 = arith.constant 0 : index
    %c0_0 = arith.constant 0 : index
    %0 = vector.load %arg1[%c0, %c0_0] : memref<8x64xf32, #tpu.memory_space<vmem>>, vector<8x64xf32>
    %1 = arith.truncf %0 : vector<8x64xf32> to vector<8x64xbf16>
    %c0_1 = arith.constant 0 : index
    %c0_2 = arith.constant 0 : index
    %2 = vector.load %arg2[%c0_1, %c0_2] : memref<64x256xbf16, #tpu.memory_space<vmem>>, vector<64x256xbf16>
    %cst = arith.constant dense<0.000000e+00> : vector<8x256xf32>
    %3 = tpu.matmul %1, %2, %cst {dimension_numbers = #tpu.dot_dimension_numbers<[1], [0], [0], [1], [0, 0, 1, 1], [], []>} : vector<8x64xbf16>, vector<64x256xbf16>, vector<8x256xf32> -> vector<8x256xf32>
    %c0_3 = arith.constant 0 : index
    %c0_4 = arith.constant 0 : index
    %4 = vector.load %arg3[%c0_3, %c0_4] : memref<1x256xf32, #tpu.memory_space<vmem>>, vector<1x256xf32>
    %5 = vector.broadcast %4 : vector<1x256xf32> to vector<8x256xf32>
    %6 = arith.addf %3, %5 : vector<8x256xf32>
    %cst_5 = arith.constant 0.000000e+00 : f32
    %7 = vector.broadcast %cst_5 : f32 to vector<8x256xf32>
    %8 = arith.cmpf ogt, %6, %7 : vector<8x256xf32>
    %cst_6 = arith.constant 0.00999999977 : f32
    %9 = vector.broadcast %cst_6 : f32 to vector<8x256xf32>
    %10 = arith.mulf %9, %6 : vector<8x256xf32>
    %11 = arith.select %8, %6, %10 : vector<8x256xi1>, vector<8x256xf32>
    %12 = arith.truncf %11 : vector<8x256xf32> to vector<8x256xbf16>
    %c0_7 = arith.constant 0 : index
    %c0_8 = arith.constant 0 : index
    %13 = vector.load %arg4[%c0_7, %c0_8] : memref<256x256xbf16, #tpu.memory_space<vmem>>, vector<256x256xbf16>
    %cst_9 = arith.constant dense<0.000000e+00> : vector<8x256xf32>
    %14 = tpu.matmul %12, %13, %cst_9 {dimension_numbers = #tpu.dot_dimension_numbers<[1], [0], [0], [1], [0, 0, 1, 1], [], []>} : vector<8x256xbf16>, vector<256x256xbf16>, vector<8x256xf32> -> vector<8x256xf32>
    %c0_10 = arith.constant 0 : index
    %c0_11 = arith.constant 0 : index
    %15 = vector.load %arg5[%c0_10, %c0_11] : memref<1x256xf32, #tpu.memory_space<vmem>>, vector<1x256xf32>
    %16 = vector.broadcast %15 : vector<1x256xf32> to vector<8x256xf32>
    %17 = arith.addf %14, %16 : vector<8x256xf32>
    %18 = math.tanh %17 : vector<8x256xf32>
    %c0_12 = arith.constant 0 : index
    %c0_13 = arith.constant 0 : index
    %19 = vector.load %arg6[%c0_12, %c0_13] : memref<8x256xf32, #tpu.memory_space<vmem>>, vector<8x256xf32>
    tpu.vector_store %arg6[%c0_12, %c0_13], %18 {strides = array<i32>} : memref<8x256xf32, #tpu.memory_space<vmem>>, vector<8x256xf32>,
    return
  }
  func.func @transform_0(%arg0: i32) -> (i32, i32) {
    %c0_i32 = arith.constant 0 : i32
    %c0_i32_0 = arith.constant 0 : i32
    return %arg0, %c0_i32 : i32, i32
  }
  func.func @transform_1(%arg0: i32) -> (i32, i32) {
    %c0_i32 = arith.constant 0 : i32
    %c0_i32_0 = arith.constant 0 : i32
    %c0_i32_1 = arith.constant 0 : i32
    return %c0_i32, %c0_i32_0 : i32, i32
  }
  func.func @transform_2(%arg0: i32) -> (i32, i32) {
    %c0_i32 = arith.constant 0 : i32
    %c0_i32_0 = arith.constant 0 : i32
    %c0_i32_1 = arith.constant 0 : i32
    return %c0_i32, %c0_i32_0 : i32, i32
  }
  func.func @transform_3(%arg0: i32) -> (i32, i32) {
    %c0_i32 = arith.constant 0 : i32
    %c0_i32_0 = arith.constant 0 : i32
    %c0_i32_1 = arith.constant 0 : i32
    return %c0_i32, %c0_i32_0 : i32, i32
  }
  func.func @transform_4(%arg0: i32) -> (i32, i32) {
    %c0_i32 = arith.constant 0 : i32
    %c0_i32_0 = arith.constant 0 : i32
    %c0_i32_1 = arith.constant 0 : i32
    return %c0_i32, %c0_i32_0 : i32, i32
  }
  func.func @transform_5(%arg0: i32) -> (i32, i32) {
    %c0_i32 = arith.constant 0 : i32
    %c0_i32_0 = arith.constant 0 : i32
    return %arg0, %c0_i32 : i32, i32
  }
}

</mosaic_0001>

<bundles_post_ra>
// kernel: tpu_custom_call.1
= control target key start
LH: loop header
LB: loop body
LE: loop exit
PB: predicated region body
PF: predicated region fallthrough
CT: control target
= control target key end

     0   :  { %10 = vsyncpa [#allocation3], 0  ;;  %s1362_s0 = inlined_call_operand.hbm [shape: f32[16,64], index: 0, kind: input, shape index: {}]   ;;  %s1363_s1 = inlined_call_operand.hbm [shape: bf16[64,256], index: 1, kind: input, shape index: {}]   ;;  %s1364_s2 = inlined_call_operand.vmem [shape: f32[1,256], index: 2, kind: input, shape index: {}]   ;;  %s1365_s3 = inlined_call_operand.hbm [shape: bf16[256,256], index: 3, kind: input, shape index: {}]   ;;  %s1366_s4 = inlined_call_operand.vmem [shape: f32[1,256], index: 4, kind: input, shape index: {}]   ;;  %s1367_s5 = inlined_call_operand.hbm [shape: f32[16,256], index: 5, kind: output, shape index: {}]  }
   0x1   :  { %12 = vsyncpa [#allocation3 + $0x1], 0 }
   0x2   :  { %13 = vsyncpa [#allocation6], 0 }
   0x3   :  { %14 = vsyncpa [#allocation4], 0 }
   0x4   :  { %16 = vsyncpa [#allocation4 + $0x1], 0  ;;  %s1126_s18 = smov 0   ;;  %s1128_s19 = smov 0  }
   0x5   :  { %s1130_s20 = smov 0   ;;  %s1132_s21 = smov 0  }
   0x6 LB: > { %s1147_s22 = sadd.s32 4294967295, %s1087_s21   ;;  %s738_s23 = sadd.s32 4294967294, %s1087_s21   ;;  %s1087_s21 = sphi %s1132_s21, %s1387_s21   ;;  %s1083_s20 = sphi %s1130_s20, %s1386_s20   ;;  %s1079_s19 = sphi %s1128_s19, %s1385_s19   ;;  %s1075_s18 = sphi %s1126_s18, %s1384_s18  }
   0x7   : > { %p42_p0 = scmp.ne.s32.totalorder %s1079_s19, %s1075_s18  ;;  %p1368_p1 = scmp.eq.s32.totalorder %s1147_s22, 0 }
   0x8   : > { %p156_p3 = scmp.eq.s32.totalorder %s738_s23, 1  ;;  %p739_p5 = scmp.ge.s32.totalorder %s1087_s21, 1 }
   0x9   : > { %p1156_p4 = por %p1368_p1, %p42_p0  ;;  %p163_p7 = scmp.lt.s32.totalorder %s1087_s21, 3 }
   0xa   : > { %p1161_p6 = por %p156_p3, %p42_p0  ;;  %s1089_s27 = smov [#allocation5]  }
   0xb   : > { %s1371_s24 = scalar_select %p1156_p4, 1, 0 }
   0xc   : > { %s1372_s25 = scalar_select %p1161_p6, 1, 0 }
   0xd   : > { %p1166_p8 = pnand %p739_p5, %p163_p7  ;;  %s175_s28 = sshll.u32 %s1089_s27, 4  ;;  %s1170_s28 = int_to_ptr.vmem [resolvable:$true] %s175_s28 }
   0xe   : > { %s1090_s30 = smov [#allocation7]   ;;  %s931_s9 = scalar_lea.hbm %s1363_s1, 1024 }
   0xf   : > { %p809_p9 = pneg %p1166_p8  ;;  %s191_s6 = sshll.u32 %s1090_s30, 4  ;;  %s1181_s6 = int_to_ptr.vmem [resolvable:$true] %s191_s6 }
  0x10   : > { %p932_p12 = scmp.ne.s32.totalorder %s1363_s1, %s931_s9  ;;  %p938_p5 = scmp.lt.u32.totalorder %s931_s9, %s1363_s1 }
  0x11   : > { %p1177_p11 = pnand %p809_p9, %p1368_p1 }
  0x13   : > { %p933_p13 = pneg %p1177_p11 }
  0x15   : > { %p934_p0 = pnand %p933_p13, %p932_p12 }
  0x17   : > { %p935_p3 = pneg %p934_p0 }
  0x19   : > { %p940_p7 = pnand %p938_p5, %p935_p3 }
  0x1b   : > { %943 = shalt.err (!%p940_p7)
}
  0x1c   : > { %s944_s14 = scalar_lea.vmem %s1170_s28, 1024  ;;  %p952_p2 = scmp.lt.s32.totalorder %s1170_s28, %s1170_s28 }
  0x1d   : > { %p945_p9 = scmp.ne.s32.totalorder %s1170_s28, %s944_s14  ;;  %p953_p12 = scmp.lt.s32.totalorder %s944_s14, %s944_s14 }
  0x1f   : > { %p947_p10 = pnand %p945_p9, %p933_p13  ;;  %p954_p0 = por %p953_p12, %p952_p2 }
  0x21   : > { %p948_p1 = pneg %p947_p10 }
  0x23   : > { %p955_p6 = pnand %p954_p0, %p948_p1 }
  0x25   : > { %958 = shalt.err (!%p955_p6)
}
  0x26   : > { %s1091_s15 = smov 128   ;;  %s1092_s16 = smov 8  }
  0x27   : > { %812 = dma.hbm_to_vmem [thread:$0]  (!%p1177_p11), %s1363_s1, 1024, %s1170_s28, [#allocation6], %s1091_s15, %s1091_s15, %s1092_s16  }
  0x28   : > { %s959_s7 = scalar_lea.hbm %s1365_s3, 4096 }
  0x29   : > { %p960_p2 = scmp.ne.s32.totalorder %s1365_s3, %s959_s7  ;;  %p966_p10 = scmp.lt.u32.totalorder %s959_s7, %s1365_s3 }
  0x2b   : > { %p962_p1 = pnand %p960_p2, %p933_p13 }
  0x2d   : > { %p963_p6 = pneg %p962_p1 }
  0x2f   : > { %p968_p3 = pnand %p966_p10, %p963_p6 }
  0x31   : > { %971 = shalt.err (!%p968_p3)
}
  0x32   : > { %s972_s28 = scalar_lea.vmem %s1181_s6, 4096  ;;  %p980_p12 = scmp.lt.s32.totalorder %s1181_s6, %s1181_s6 }
  0x33   : > { %p973_p5 = scmp.ne.s32.totalorder %s1181_s6, %s972_s28  ;;  %p981_p0 = scmp.lt.s32.totalorder %s972_s28, %s972_s28 }
  0x35   : > { %p975_p7 = pnand %p973_p5, %p933_p13  ;;  %p982_p2 = por %p981_p0, %p980_p12 }
  0x37   : > { %p976_p9 = pneg %p975_p7 }
  0x39   : > { %p983_p1 = pnand %p982_p2, %p976_p9 }
  0x3b   : > { %986 = shalt.err (!%p983_p1)
}
  0x3c   : > { %815 = dma.hbm_to_vmem [thread:$0]  (!%p1177_p11), %s1365_s3, 4096, %s1181_s6, [#allocation6], %s1091_s15, %s1091_s15, %s1092_s16  }
  0x3d   : > { %s1236_s14 = sadd.s32 1, %s1087_s21   ;;  %s29_s29 = sadd.s32 1, %s1083_s20 }
  0x3e   : > { %s26_s17 = ssub.s32 %s1087_s21, %s1236_s14  ;;  %p36_p13 = scmp.ne.s32.totalorder %s1083_s20, %s1079_s19 }
  0x3f   : > { %p27_p6 = scmp.eq.s32.totalorder %s26_s17, 0  ;;  %p37_p10 = scmp.eq.s32.totalorder %s1087_s21, 0 }
  0x40   : > { %p1375_p3 = scmp.eq.s32.totalorder %s1147_s22, 1  ;;  %p826_p7 = scmp.lt.s32.totalorder %s1087_s21, 2 }
  0x41   : > { %s1252_s27 = scalar_select %p27_p6, %s1083_s20, %s29_s29  }
  0x42   : > { %p1246_p5 = por %p1375_p3, %p36_p13  ;;  %p38_p9 = por %p37_p10, %p36_p13 }
  0x43   : > { %s208_s30 = sand.u32 1, %s1083_s20   ;;  %s744_s6 = sshll.u32 %s1087_s21, 7 }
  0x44   : > { %s1376_s23 = scalar_select %p1246_p5, 1, 0 }
  0x45   : > { %s743_s7 = sshll.u32 %s208_s30, 3  ;;  %s1259_s8 = scalar_lea.hbm %s1362_s0, %s744_s6 }
  0x46   : > { %s212_s9 = scalar_lea.vmem [#allocation2], %s743_s7  ;;  %p1263_p11 = pnand %p826_p7, %p38_p9 }
  0x47   : > { %s219_s10 = sshll.u32 %s212_s9, 4  ;;  %s209_s28 = scalar_lea.sflag [#allocation3], %s208_s30  ;;  %s1261_s10 = int_to_ptr.vmem [resolvable:$true] %s219_s10 }
  0x48   : > { %s987_s12 = scalar_lea.hbm %s1259_s8, 128  ;;  %p989_p0 = pneg %p1263_p11 }
  0x49   : > { %p988_p12 = scmp.ne.s32.totalorder %s1259_s8, %s987_s12  ;;  %s992_s17 = scalar_lea.hbm %s1362_s0, 256 }
  0x4a   : > { %p993_p13 = scmp.lt.u32.totalorder %s1259_s8, %s1362_s0  ;;  %p994_p6 = scmp.lt.u32.totalorder %s992_s17, %s987_s12 }
  0x4b   : > { %p990_p2 = pnand %p989_p0, %p988_p12  ;;  %p996_p3 = scmp.lt.u32.totalorder %s987_s12, %s1259_s8 }
  0x4c   : > { %p995_p10 = por %p994_p6, %p993_p13 }
  0x4d   : > { %p991_p1 = pneg %p990_p2 }
  0x4e   : > { %p997_p7 = por %p996_p3, %p995_p10 }
  0x50   : > { %p998_p9 = pnand %p997_p7, %p991_p1 }
  0x52   : > { %1001 = shalt.err (!%p998_p9)
}
  0x53   : > { %s1002_s30 = scalar_lea.vmem %s1261_s10, 128  ;;  %s1093_s15 = smov [#allocation2]  }
  0x54   : > { %p1003_p12 = scmp.ne.s32.totalorder %s1261_s10, %s1002_s30  ;;  %s1007_s16 = sshll.u32 %s1093_s15, 4  ;;  %s1008_s16 = int_to_ptr.vmem [resolvable:$false] %s1007_s16 }
  0x55   : > { %s1009_s9 = scalar_lea.vmem %s1008_s16, 256  ;;  %p1010_p4 = scmp.lt.s32.totalorder %s1261_s10, %s1008_s16 }
  0x56   : > { %p1005_p2 = pnand %p1003_p12, %p989_p0  ;;  %p1011_p13 = scmp.lt.s32.totalorder %s1009_s9, %s1002_s30 }
  0x58   : > { %p1006_p5 = pneg %p1005_p2  ;;  %p1012_p6 = por %p1011_p13, %p1010_p4 }
  0x5a   : > { %p1013_p10 = pnand %p1012_p6, %p1006_p5 }
  0x5c   : > { %1016 = shalt.err (!%p1013_p10)
}
  0x5d   : > { %819 = dma.hbm_to_vmem [thread:$0]  (!%p1263_p11), %s1259_s8, 128, %s1261_s10, %s209_s28  }
  0x5e   : > { %228 = sbr.rel (%p1166_p8) target bundleno = 583 (0x247), region = 40  ;;  %s1295_s12 = sand.u32 (!%p1166_p8), 1, %s1079_s19  }
  0x5f   : > { %s746_s13 = sshll.u32 (!%p1166_p8), %s1295_s12, 3  ;;  %s231_s29 = scalar_lea.sflag (!%p1166_p8), [#allocation3], %s1295_s12 }
  0x60   : > { %s234_s17 = scalar_lea.vmem (!%p1166_p8), [#allocation2], %s746_s13  ;;  %p1378_p4 = scmp.ne.s32.totalorder (!%p1166_p8), %s1371_s24, 0 }
  0x65   : > { %1062 = dma.done.wait (%p1378_p4), %s231_s29, 128  }
  0x66   : > { %1064 = vsyncadd (%p1378_p4), %s231_s29, 4294967168  ;;  %p1379_p5 = scmp.eq.s32.totalorder %s1147_s22, 0 }
  0x68   : > { %1066 = dma.done.wait (%p1379_p5), [#allocation6], 5120   ;;  %p1380_p11 = pmov %p1379_p5 }
  0x69   : > { %v1094_v0 = vmov 0   ;;  %v867_v1 = vld [vmem:[#allocation5 + $0x4] ss:$8 sps:$4 sm:$0xff]   ;;  %v869_v2 = vld [vmem:[#allocation5] ss:$8 sps:$4 sm:$0xff]   ;;  %v270_v14 = vld [vmem:[%s234_s17] sm:$0xff]  ;;  %v282_v43 = vlaneseq }
  0x6a   : > { %1068 = vsyncadd (%p1380_p11), [#allocation6], 4294962176  ;;  %368 = vmatprep.mubr.bf16.mxu0 %v1094_v0  ;;  %336 = vmatprep.subr.bf16.mxu0 %v867_v1  ;;  %v870_v3 = vld [vmem:[#allocation5 + $0x14] ss:$8 sps:$4 sm:$0xff]   ;;  %v872_v4 = vld [vmem:[#allocation5 + $0x10] ss:$8 sps:$4 sm:$0xff]   ;;  %v271_v16 = vpack.c.bf16 %v270_v14, %v270_v14 }
  0x6b   : > { %337 = vmatpush1.bf16.msra.mxu0 %v869_v2  ;;  %v873_v5 = vld [vmem:[#allocation5 + $0x24] ss:$8 sps:$4 sm:$0xff]   ;;  %v875_v6 = vld [vmem:[#allocation5 + $0x20] ss:$8 sps:$4 sm:$0xff]   ;;  %v882_v9 = vld [vmem:[#allocation7 + $0x14] ss:$8 sps:$4 sm:$0xff]  }
  0x6c   : > { %338 = vmatprep.subr.bf16.mxu0 %v870_v3  ;;  %v879_v7 = vld [vmem:[#allocation7 + $0x4] ss:$8 sps:$4 sm:$0xff]   ;;  %v881_v8 = vld [vmem:[#allocation7] ss:$8 sps:$4 sm:$0xff]   ;;  %v876_v10 = vld [vmem:[#allocation5 + $0x34] ss:$8 sps:$4 sm:$0xff]  }
  0x6d   : > { %589 = vmatprep.subr.bf16.mxu1 %v879_v7  ;;  %v884_v11 = vld [vmem:[#allocation7 + $0x10] ss:$8 sps:$4 sm:$0xff]   ;;  %v885_v13 = vld [vmem:[#allocation7 + $0x24] ss:$8 sps:$4 sm:$0xff]   ;;  %v887_v15 = vld [vmem:[#allocation7 + $0x20] ss:$8 sps:$4 sm:$0xff]  }
  0x6e   : > { %590 = vmatpush1.bf16.msra.mxu1 %v881_v8  ;;  %v878_v12 = vld [vmem:[#allocation5 + $0x30] ss:$8 sps:$4 sm:$0xff]   ;;  %v888_v17 = vld [vmem:[#allocation7 + $0x34] ss:$8 sps:$4 sm:$0xff]   ;;  %vm332_vm0 = vcmask 523264   ;;  %v283_v44 = vshrl.u32 %v282_v43, 7 }
  0x6f   : > { %339 = vmatpush1.bf16.msra.mxu0 %v872_v4  ;;  %591 = vmatprep.subr.bf16.mxu1 %v882_v9  ;;  %v890_v18 = vld [vmem:[#allocation7 + $0x30] ss:$8 sps:$4 sm:$0xff]   ;;  %v891_v19 = vld [vmem:[#allocation7 + $0x44] ss:$8 sps:$4 sm:$0xff]   ;;  %v893_v20 = vld [vmem:[#allocation7 + $0x40] ss:$8 sps:$4 sm:$0xff]  }
  0x70   : > { %340 = vmatprep.subr.bf16.mxu0 %v873_v5  ;;  %v894_v21 = vld [vmem:[#allocation7 + $0x54] ss:$8 sps:$4 sm:$0xff]   ;;  %v896_v22 = vld [vmem:[#allocation7 + $0x50] ss:$8 sps:$4 sm:$0xff]   ;;  %v897_v23 = vld [vmem:[#allocation7 + $0x64] ss:$8 sps:$4 sm:$0xff]  }
  0x71   : > { %v899_v24 = vld [vmem:[#allocation7 + $0x60] ss:$8 sps:$4 sm:$0xff]   ;;  %v900_v25 = vld [vmem:[#allocation7 + $0x74] ss:$8 sps:$4 sm:$0xff]   ;;  %v902_v26 = vld [vmem:[#allocation7 + $0x70] ss:$8 sps:$4 sm:$0xff]  }
  0x72   : > { %592 = vmatpush1.bf16.msra.mxu1 %v884_v11  ;;  %v903_v27 = vld [vmem:[#allocation7 + $0x84] ss:$8 sps:$4 sm:$0xff]   ;;  %v905_v28 = vld [vmem:[#allocation7 + $0x80] ss:$8 sps:$4 sm:$0xff]   ;;  %v906_v29 = vld [vmem:[#allocation7 + $0x94] ss:$8 sps:$4 sm:$0xff]  }
  0x73   : > { %341 = vmatpush1.bf16.msra.mxu0 %v875_v6  ;;  %593 = vmatprep.subr.bf16.mxu1 %v885_v13  ;;  %v908_v30 = vld [vmem:[#allocation7 + $0x90] ss:$8 sps:$4 sm:$0xff]   ;;  %v909_v31 = vld [vmem:[#allocation7 + $0xa4] ss:$8 sps:$4 sm:$0xff]   ;;  %v911_v32 = vld [vmem:[#allocation7 + $0xa0] ss:$8 sps:$4 sm:$0xff]  }
  0x74   : > { %342 = vmatprep.subr.bf16.mxu0 %v876_v10  ;;  %v912_v33 = vld [vmem:[#allocation7 + $0xb4] ss:$8 sps:$4 sm:$0xff]   ;;  %v914_v34 = vld [vmem:[#allocation7 + $0xb0] ss:$8 sps:$4 sm:$0xff]   ;;  %v915_v35 = vld [vmem:[#allocation7 + $0xc4] ss:$8 sps:$4 sm:$0xff]  }
  0x75   : > { %v917_v36 = vld [vmem:[#allocation7 + $0xc0] ss:$8 sps:$4 sm:$0xff]   ;;  %v918_v37 = vld [vmem:[#allocation7 + $0xd4] ss:$8 sps:$4 sm:$0xff]   ;;  %v920_v38 = vld [vmem:[#allocation7 + $0xd0] ss:$8 sps:$4 sm:$0xff]  }
  0x76   : > { %594 = vmatpush1.bf16.msra.mxu1 %v887_v15  ;;  %v921_v39 = vld [vmem:[#allocation7 + $0xe4] ss:$8 sps:$4 sm:$0xff]   ;;  %v923_v40 = vld [vmem:[#allocation7 + $0xe0] ss:$8 sps:$4 sm:$0xff]   ;;  %v924_v41 = vld [vmem:[#allocation7 + $0xf4] ss:$8 sps:$4 sm:$0xff]  }
  0x77   : > { %343 = vmatpush1.bf16.msra.mxu0 %v878_v12  ;;  %595 = vmatprep.subr.bf16.mxu1 %v888_v17  ;;  %v926_v42 = vld [vmem:[#allocation7 + $0xf0] ss:$8 sps:$4 sm:$0xff]   ;;  %v284_v45 = vsub.s32 0, %v283_v44  ;;  %v288_v47 = vsub.s32 1, %v283_v44  ;;  %s749_s11 = sshll.u32 %s1295_s12, 4  ;;  %s796_s28 = sshll.u32 %s1147_s22, 8 }
  0x78   : > { %v280_v46 = vld [vmem:[%s1364_s2] sm:$0x3]  ;;  %s268_s7 = scalar_lea.vmem [#allocation8], %s749_s11  ;;  %s1318_s16 = scalar_lea.hbm %s1367_s5, %s796_s28 }
  0x79   : > { %v285_v48 = vrot.slane %v280_v46, %v284_v45  ;;  %v289_v49 = vrot.slane %v280_v46, %v288_v47  ;;  %v417_v62 = vld [vmem:[%s1366_s4] sm:$0x3]  ;;  %s649_s6 = sshll.u32 %s268_s7, 4  ;;  %s635_s9 = scalar_lea.sflag [#allocation4], %s1295_s12  ;;  %s1320_s6 = int_to_ptr.vmem [resolvable:$true] %s649_s6 }
  0x7a   : > { %758 = vmatmul.mubr.msk.bf16.vlgmr.msra.gmra.mrb[0].mxu0 %vm332_vm0, %v271_v16  ;;  %596 = vmatpush1.bf16.msra.mxu1 %v890_v18  ;;  %v422_v63 = vrot.slane %v417_v62, %v284_v45  ;;  %v426_v0 = vrot.slane %v417_v62, %v288_v47  ;;  %s1017_s13 = scalar_lea.vmem %s1320_s6, 256  ;;  %p1381_p0 = scmp.ne.s32.totalorder %s1376_s23, 0 }
  0x7b   : > { %597 = vmatprep.subr.bf16.mxu1 %v891_v19  ;;  %p1018_p8 = scmp.ne.s32.totalorder %s1320_s6, %s1017_s13  ;;  %s1095_s22 = smov [#allocation8]  }
  0x7c   : > { %s1021_s29 = sshll.u32 %s1095_s22, 4  ;;  %s1022_s29 = int_to_ptr.vmem [resolvable:$false] %s1021_s29 }
  0x7d   : > { %p1019_p1 = pnand %p1018_p8, %p1381_p0  ;;  %s1023_s17 = scalar_lea.vmem %s1022_s29, 512 }
  0x7e   : > { %598 = vmatpush1.bf16.msra.mxu1 %v893_v20  ;;  %p1024_p7 = scmp.lt.s32.totalorder %s1320_s6, %s1022_s29  ;;  %p1025_p9 = scmp.lt.s32.totalorder %s1023_s17, %s1017_s13 }
  0x7f   : > { %599 = vmatprep.subr.bf16.mxu1 %v894_v21  ;;  %p1020_p3 = pneg %p1019_p1 }
  0x80   : > { %p1026_p12 = por %p1025_p9, %p1024_p7 }
  0x82   : > { %600 = vmatpush1.bf16.msra.mxu1 %v896_v22  ;;  %p1027_p2 = pnand %p1026_p12, %p1020_p3 }
  0x83   : > { %601 = vmatprep.subr.bf16.mxu1 %v897_v23 }
  0x86   : > { %602 = vmatpush1.bf16.msra.mxu1 %v899_v24 }
  0x87   : > { %603 = vmatprep.subr.bf16.mxu1 %v900_v25 }
  0x8a   : > { %604 = vmatpush1.bf16.msra.mxu1 %v902_v26 }
  0x8b   : > { %605 = vmatprep.subr.bf16.mxu1 %v903_v27 }
  0x8e   : > { %606 = vmatpush1.bf16.msra.mxu1 %v905_v28 }
  0x8f   : > { %607 = vmatprep.subr.bf16.mxu1 %v906_v29 }
  0x92   : > { %608 = vmatpush1.bf16.msra.mxu1 %v908_v30 }
  0x93   : > { %609 = vmatprep.subr.bf16.mxu1 %v909_v31 }
  0x96   : > { %610 = vmatpush1.bf16.msra.mxu1 %v911_v32 }
  0x97   : > { %611 = vmatprep.subr.bf16.mxu1 %v912_v33 }
  0x9a   : > { %612 = vmatpush1.bf16.msra.mxu1 %v914_v34 }
  0x9b   : > { %613 = vmatprep.subr.bf16.mxu1 %v915_v35 }
  0x9e   : > { %614 = vmatpush1.bf16.msra.mxu1 %v917_v36 }
  0x9f   : > { %615 = vmatprep.subr.bf16.mxu1 %v918_v37 }
  0xa2   : > { %616 = vmatpush1.bf16.msra.mxu1 %v920_v38 }
  0xa3   : > { %617 = vmatprep.subr.bf16.mxu1 %v921_v39 }
  0xa6   : > { %618 = vmatpush1.bf16.msra.mxu1 %v923_v40 }
  0xa7   : > { %619 = vmatprep.subr.bf16.mxu1 %v924_v41 }
  0xaa   : > { %620 = vmatpush1.bf16.msra.mxu1 %v926_v42 }
 0x14d   : > { %v370_v50 = vpop.f32.mrb[0].mxu0 }
 0x14e   : > { %v371_v51 = vadd.f32 %v370_v50, %v285_v48  ;;  %v372_v52 = vpop.f32.mrb[1].mxu0 }
 0x14f   : > { %v373_v53 = vadd.f32 %v372_v52, %v289_v49  ;;  %v374_v54 = vpop.f32.mrb[2].mxu0 }
 0x150   : > { %vm377_vm1 = vcmp.gt.f32.partialorder %v371_v51, 0.0  ;;  %v379_v55 = vmul.f32 0.01, %v371_v51  ;;  %v375_v56 = vpop.f32.mrb[3].mxu0 }
 0x151   : > { %vm378_vm2 = vcmp.gt.f32.partialorder %v373_v53, 0.0  ;;  %v380_v57 = vmul.f32 0.01, %v373_v53 }
 0x152   : > { %v381_v58 = vsel %vm377_vm1, %v371_v51, %v379_v55 }
 0x153   : > { %v382_v59 = vsel %vm378_vm2, %v373_v53, %v380_v57  ;;  %v383_v61 = vpack.c.bf16 %v381_v58, %v381_v58 }
 0x154   : > { %v384_v60 = vpack.c.bf16 %v382_v59, %v382_v59 }
 0x156   : > { %621 = vmatprep.mubr.bf16.mxu1 %v384_v60 }
 0x157   : > { %622 = vmatmul.mubr.bf16.vlgmr.msra.gmra.mrb[0].mxu1 %v383_v61 }
 0x22a   : > { %v623_v1 = vpop.f32.mrb[0].mxu1 }
 0x22b   : > { %v624_v2 = vadd.f32 %v623_v1, %v422_v63  ;;  %v625_v3 = vpop.f32.mrb[1].mxu1 }
 0x22c   : > { %v626_v4 = vadd.f32 %v625_v3, %v426_v0  ;;  %v627_v5 = vpop.f32.mrb[2].mxu1 }
 0x22d   : > { %927 = vtanh.f32 %v624_v2  ;;  %v628_v6 = vpop.f32.mrb[3].mxu1 }
 0x22e   : > { %929 = vtanh.f32 %v626_v4 }
 0x237   : > { %v928_v7 = vpop.eup %927 }
 0x238   : > { %v930_v8 = vpop.eup %929  ;;  %632 = vst [vmem:[%s268_s7] sm:$0xff] %v928_v7 }
 0x239   : > { %633 = vst [vmem:[%s268_s7 + $0x8] sm:$0xff] %v930_v8 }
 0x23a   : > { %1030 = shalt.err (!%p1027_p2)
}
 0x23b   : > { %s1031_s12 = scalar_lea.hbm %s1318_s16, 256  ;;  %s1035_s8 = scalar_lea.hbm %s1367_s5, 512 }
 0x23c   : > { %p1032_p13 = scmp.ne.s32.totalorder %s1318_s16, %s1031_s12  ;;  %p1036_p4 = scmp.lt.u32.totalorder %s1318_s16, %s1367_s5 }
 0x23d   : > { %p1037_p5 = scmp.lt.u32.totalorder %s1035_s8, %s1031_s12  ;;  %p1039_p8 = scmp.lt.u32.totalorder %s1031_s12, %s1318_s16 }
 0x23e   : > { %p1033_p6 = pnand %p1032_p13, %p1381_p0 }
 0x23f   : > { %p1038_p11 = por %p1037_p5, %p1036_p4 }
 0x240   : > { %p1034_p10 = pneg %p1033_p6 }
 0x241   : > { %p1040_p1 = por %p1039_p8, %p1038_p11 }
 0x243   : > { %p1041_p3 = pnand %p1040_p1, %p1034_p10 }
 0x245   : > { %1044 = shalt.err (!%p1041_p3)
}
 0x246   : > { %807 = dma.vmem_to_hbm [thread:$0]  (%p1381_p0), %s1320_s6, 256, %s1318_s16, %s635_s9  }
 0x247 PF: > { %s661_s28 = sand.u32 1, %s1075_s18   ;;  %p1382_p7 = scmp.ne.s32.totalorder %s1372_s25, 0 }
 0x248   : > { %p1383_p9 = scmp.ge.s32.totalorder %s1087_s21, 2  ;;  %s662_s7 = scalar_lea.sflag [#allocation4], %s661_s28 }
 0x24a   : > { %p821_p12 = pnand %p1383_p9, %p1382_p7 }
 0x24c   : > { %1070 = dma.done.wait (!%p821_p12), %s662_s7, 256  }
 0x24d   : > { %1072 = vsyncadd (!%p821_p12), %s662_s7, 4294967040  ;;  %p19_p2 = scmp.ge.s32.totalorder %s1236_s14, 4   ;;  %s1384_s18 = smov %s1079_s19 }
 0x24e   : > { %s1385_s19 = smov %s1083_s20  ;;  %s1386_s20 = smov %s1252_s27 }
 0x24f   : > { %s1387_s21 = smov %s1236_s14  ;;  %21 = sbr.rel (!%p19_p2) target bundleno = 6 (0x6), region = 93 }
 0x256   :  { %667 = vsyncpa [#allocation3], 1 }
 0x257   :  { %669 = vsyncpa [#allocation3 + $0x1], 1 }
 0x258   :  { %670 = vsyncpa [#allocation6], 1 }
 0x259   :  { %671 = vsyncpa [#allocation4], 1 }
 0x25a   :  { %673 = vsyncpa [#allocation4 + $0x1], 1 }

// kernel: tpu_custom_call.1
= control target key start
LH: loop header
LB: loop body
LE: loop exit
PB: predicated region body
PF: predicated region fallthrough
CT: control target
= control target key end

     0   :  { %10 = vsyncpa [#allocation3], 0  ;;  %s1362_s0 = inlined_call_operand.hbm [shape: f32[16,64], index: 0, kind: input, shape index: {}]   ;;  %s1363_s1 = inlined_call_operand.hbm [shape: bf16[64,256], index: 1, kind: input, shape index: {}]   ;;  %s1364_s2 = inlined_call_operand.vmem [shape: f32[1,256], index: 2, kind: input, shape index: {}]   ;;  %s1365_s3 = inlined_call_operand.hbm [shape: bf16[256,256], index: 3, kind: input, shape index: {}]   ;;  %s1366_s4 = inlined_call_operand.vmem [shape: f32[1,256], index: 4, kind: input, shape index: {}]   ;;  %s1367_s5 = inlined_call_operand.hbm [shape: f32[16,256], index: 5, kind: output, shape index: {}]  }
   0x1   :  { %12 = vsyncpa [#allocation3 + $0x1], 0 }
   0x2   :  { %13 = vsyncpa [#allocation6], 0 }
   0x3   :  { %14 = vsyncpa [#allocation4], 0 }
   0x4   :  { %16 = vsyncpa [#allocation4 + $0x1], 0  ;;  %s1126_s18 = smov 0   ;;  %s1128_s19 = smov 0  }
   0x5   :  { %s1130_s20 = smov 0   ;;  %s1132_s21 = smov 0  }
   0x6 LB: > { %s1147_s22 = sadd.s32 4294967295, %s1087_s21   ;;  %s738_s23 = sadd.s32 4294967294, %s1087_s21   ;;  %s1087_s21 = sphi %s1132_s21, %s1387_s21   ;;  %s1083_s20 = sphi %s1130_s20, %s1386_s20   ;;  %s1079_s19 = sphi %s1128_s19, %s1385_s19   ;;  %s1075_s18 = sphi %s1126_s18, %s1384_s18  }
   0x7   : > { %p42_p0 = scmp.ne.s32.totalorder %s1079_s19, %s1075_s18  ;;  %p1368_p1 = scmp.eq.s32.totalorder %s1147_s22, 0 }
   0x8   : > { %p156_p3 = scmp.eq.s32.totalorder %s738_s23, 1  ;;  %p739_p5 = scmp.ge.s32.totalorder %s1087_s21, 1 }
   0x9   : > { %p1156_p4 = por %p1368_p1, %p42_p0  ;;  %p163_p7 = scmp.lt.s32.totalorder %s1087_s21, 3 }
   0xa   : > { %p1161_p6 = por %p156_p3, %p42_p0  ;;  %s1089_s27 = smov [#allocation5]  }
   0xb   : > { %s1371_s24 = scalar_select %p1156_p4, 1, 0 }
   0xc   : > { %s1372_s25 = scalar_select %p1161_p6, 1, 0 }
   0xd   : > { %p1166_p8 = pnand %p739_p5, %p163_p7  ;;  %s175_s28 = sshll.u32 %s1089_s27, 4  ;;  %s1170_s28 = int_to_ptr.vmem [resolvable:$true] %s175_s28 }
   0xe   : > { %s1090_s30 = smov [#allocation7]   ;;  %s931_s9 = scalar_lea.hbm %s1363_s1, 1024 }
   0xf   : > { %p809_p9 = pneg %p1166_p8  ;;  %s191_s6 = sshll.u32 %s1090_s30, 4  ;;  %s1181_s6 = int_to_ptr.vmem [resolvable:$true] %s191_s6 }
  0x10   : > { %p932_p12 = scmp.ne.s32.totalorder %s1363_s1, %s931_s9  ;;  %p938_p5 = scmp.lt.u32.totalorder %s931_s9, %s1363_s1 }
  0x11   : > { %p1177_p11 = pnand %p809_p9, %p1368_p1 }
  0x13   : > { %p933_p13 = pneg %p1177_p11 }
  0x15   : > { %p934_p0 = pnand %p933_p13, %p932_p12 }
  0x17   : > { %p935_p3 = pneg %p934_p0 }
  0x19   : > { %p940_p7 = pnand %p938_p5, %p935_p3 }
  0x1b   : > { %943 = shalt.err (!%p940_p7)
}
  0x1c   : > { %s944_s14 = scalar_lea.vmem %s1170_s28, 1024  ;;  %p952_p2 = scmp.lt.s32.totalorder %s1170_s28, %s1170_s28 }
  0x1d   : > { %p945_p9 = scmp.ne.s32.totalorder %s1170_s28, %s944_s14  ;;  %p953_p12 = scmp.lt.s32.totalorder %s944_s14, %s944_s14 }
  0x1f   : > { %p947_p10 = pnand %p945_p9, %p933_p13  ;;  %p954_p0 = por %p953_p12, %p952_p2 }
  0x21   : > { %p948_p1 = pneg %p947_p10 }
  0x23   : > { %p955_p6 = pnand %p954_p0, %p948_p1 }
  0x25   : > { %958 = shalt.err (!%p955_p6)
}
  0x26   : > { %s1091_s15 = smov 128   ;;  %s1092_s16 = smov 8  }
  0x27   : > { %812 = dma.hbm_to_vmem [thread:$0]  (!%p1177_p11), %s1363_s1, 1024, %s1170_s28, [#allocation6], %s1091_s15, %s1091_s15, %s1092_s16  }
  0x28   : > { %s959_s7 = scalar_lea.hbm %s1365_s3, 4096 }
  0x29   : > { %p960_p2 = scmp.ne.s32.totalorder %s1365_s3, %s959_s7  ;;  %p966_p10 = scmp.lt.u32.totalorder %s959_s7, %s1365_s3 }
  0x2b   : > { %p962_p1 = pnand %p960_p2, %p933_p13 }
  0x2d   : > { %p963_p6 = pneg %p962_p1 }
  0x2f   : > { %p968_p3 = pnand %p966_p10, %p963_p6 }
  0x31   : > { %971 = shalt.err (!%p968_p3)
}
  0x32   : > { %s972_s28 = scalar_lea.vmem %s1181_s6, 4096  ;;  %p980_p12 = scmp.lt.s32.totalorder %s1181_s6, %s1181_s6 }
  0x33   : > { %p973_p5 = scmp.ne.s32.totalorder %s1181_s6, %s972_s28  ;;  %p981_p0 = scmp.lt.s32.totalorder %s972_s28, %s972_s28 }
  0x35   : > { %p975_p7 = pnand %p973_p5, %p933_p13  ;;  %p982_p2 = por %p981_p0, %p980_p12 }
  0x37   : > { %p976_p9 = pneg %p975_p7 }
  0x39   : > { %p983_p1 = pnand %p982_p2, %p976_p9 }
  0x3b   : > { %986 = shalt.err (!%p983_p1)
}
  0x3c   : > { %815 = dma.hbm_to_vmem [thread:$0]  (!%p1177_p11), %s1365_s3, 4096, %s1181_s6, [#allocation6], %s1091_s15, %s1091_s15, %s1092_s16  }
  0x3d   : > { %s1236_s14 = sadd.s32 1, %s1087_s21   ;;  %s29_s29 = sadd.s32 1, %s1083_s20 }
  0x3e   : > { %s26_s17 = ssub.s32 %s1087_s21, %s1236_s14  ;;  %p36_p13 = scmp.ne.s32.totalorder %s1083_s20, %s1079_s19 }
  0x3f   : > { %p27_p6 = scmp.eq.s32.totalorder %s26_s17, 0  ;;  %p37_p10 = scmp.eq.s32.totalorder %s1087_s21, 0 }
  0x40   : > { %p1375_p3 = scmp.eq.s32.totalorder %s1147_s22, 1  ;;  %p826_p7 = scmp.lt.s32.totalorder %s1087_s21, 2 }
  0x41   : > { %s1252_s27 = scalar_select %p27_p6, %s1083_s20, %s29_s29  }
  0x42   : > { %p1246_p5 = por %p1375_p3, %p36_p13  ;;  %p38_p9 = por %p37_p10, %p36_p13 }
  0x43   : > { %s208_s30 = sand.u32 1, %s1083_s20   ;;  %s744_s6 = sshll.u32 %s1087_s21, 7 }
  0x44   : > { %s1376_s23 = scalar_select %p1246_p5, 1, 0 }
  0x45   : > { %s743_s7 = sshll.u32 %s208_s30, 3  ;;  %s1259_s8 = scalar_lea.hbm %s1362_s0, %s744_s6 }
  0x46   : > { %s212_s9 = scalar_lea.vmem [#allocation2], %s743_s7  ;;  %p1263_p11 = pnand %p826_p7, %p38_p9 }
  0x47   : > { %s219_s10 = sshll.u32 %s212_s9, 4  ;;  %s209_s28 = scalar_lea.sflag [#allocation3], %s208_s30  ;;  %s1261_s10 = int_to_ptr.vmem [resolvable:$true] %s219_s10 }
  0x48   : > { %s987_s12 = scalar_lea.hbm %s1259_s8, 128  ;;  %p989_p0 = pneg %p1263_p11 }
  0x49   : > { %p988_p12 = scmp.ne.s32.totalorder %s1259_s8, %s987_s12  ;;  %s992_s17 = scalar_lea.hbm %s1362_s0, 256 }
  0x4a   : > { %p993_p13 = scmp.lt.u32.totalorder %s1259_s8, %s1362_s0  ;;  %p994_p6 = scmp.lt.u32.totalorder %s992_s17, %s987_s12 }
  0x4b   : > { %p990_p2 = pnand %p989_p0, %p988_p12  ;;  %p996_p3 = scmp.lt.u32.totalorder %s987_s12, %s1259_s8 }
  0x4c   : > { %p995_p10 = por %p994_p6, %p993_p13 }
  0x4d   : > { %p991_p1 = pneg %p990_p2 }
  0x4e   : > { %p997_p7 = por %p996_p3, %p995_p10 }
  0x50   : > { %p998_p9 = pnand %p997_p7, %p991_p1 }
  0x52   : > { %1001 = shalt.err (!%p998_p9)
}
  0x53   : > { %s1002_s30 = scalar_lea.vmem %s1261_s10, 128  ;;  %s1093_s15 = smov [#allocation2]  }
  0x54   : > { %p1003_p12 = scmp.ne.s32.totalorder %s1261_s10, %s1002_s30  ;;  %s1007_s16 = sshll.u32 %s1093_s15, 4  ;;  %s1008_s16 = int_to_ptr.vmem [resolvable:$false] %s1007_s16 }
  0x55   : > { %s1009_s9 = scalar_lea.vmem %s1008_s16, 256  ;;  %p1010_p4 = scmp.lt.s32.totalorder %s1261_s10, %s1008_s16 }
  0x56   : > { %p1005_p2 = pnand %p1003_p12, %p989_p0  ;;  %p1011_p13 = scmp.lt.s32.totalorder %s1009_s9, %s1002_s30 }
  0x58   : > { %p1006_p5 = pneg %p1005_p2  ;;  %p1012_p6 = por %p1011_p13, %p1010_p4 }
  0x5a   : > { %p1013_p10 = pnand %p1012_p6, %p1006_p5 }
  0x5c   : > { %1016 = shalt.err (!%p1013_p10)
}
  0x5d   : > { %819 = dma.hbm_to_vmem [thread:$0]  (!%p1263_p11), %s1259_s8, 128, %s1261_s10, %s209_s28  }
  0x5e   : > { %228 = sbr.rel (%p1166_p8) target bundleno = 583 (0x247), region = 40  ;;  %s1295_s12 = sand.u32 (!%p1166_p8), 1, %s1079_s19  }
  0x5f   : > { %s746_s13 = sshll.u32 (!%p1166_p8), %s1295_s12, 3  ;;  %s231_s29 = scalar_lea.sflag (!%p1166_p8), [#allocation3], %s1295_s12 }
  0x60   : > { %s234_s17 = scalar_lea.vmem (!%p1166_p8), [#allocation2], %s746_s13  ;;  %p1378_p4 = scmp.ne.s32.totalorder (!%p1166_p8), %s1371_s24, 0 }
  0x65   : > { %1062 = dma.done.wait (%p1378_p4), %s231_s29, 128  }
  0x66   : > { %1064 = vsyncadd (%p1378_p4), %s231_s29, 4294967168  ;;  %p1379_p5 = scmp.eq.s32.totalorder %s1147_s22, 0 }
  0x68   : > { %1066 = dma.done.wait (%p1379_p5), [#allocation6], 5120   ;;  %p1380_p11 = pmov %p1379_p5 }
  0x69   : > { %v1094_v0 = vmov 0   ;;  %v867_v1 = vld [vmem:[#allocation5 + $0x4] ss:$8 sps:$4 sm:$0xff]   ;;  %v869_v2 = vld [vmem:[#allocation5] ss:$8 sps:$4 sm:$0xff]   ;;  %v270_v14 = vld [vmem:[%s234_s17] sm:$0xff]  ;;  %v282_v43 = vlaneseq }
  0x6a   : > { %1068 = vsyncadd (%p1380_p11), [#allocation6], 4294962176  ;;  %368 = vmatprep.mubr.bf16.mxu0 %v1094_v0  ;;  %336 = vmatprep.subr.bf16.mxu0 %v867_v1  ;;  %v870_v3 = vld [vmem:[#allocation5 + $0x14] ss:$8 sps:$4 sm:$0xff]   ;;  %v872_v4 = vld [vmem:[#allocation5 + $0x10] ss:$8 sps:$4 sm:$0xff]   ;;  %v271_v16 = vpack.c.bf16 %v270_v14, %v270_v14 }
  0x6b   : > { %337 = vmatpush1.bf16.msra.mxu0 %v869_v2  ;;  %v873_v5 = vld [vmem:[#allocation5 + $0x24] ss:$8 sps:$4 sm:$0xff]   ;;  %v875_v6 = vld [vmem:[#allocation5 + $0x20] ss:$8 sps:$4 sm:$0xff]   ;;  %v882_v9 = vld [vmem:[#allocation7 + $0x14] ss:$8 sps:$4 sm:$0xff]  }
  0x6c   : > { %338 = vmatprep.subr.bf16.mxu0 %v870_v3  ;;  %v879_v7 = vld [vmem:[#allocation7 + $0x4] ss:$8 sps:$4 sm:$0xff]   ;;  %v881_v8 = vld [vmem:[#allocation7] ss:$8 sps:$4 sm:$0xff]   ;;  %v876_v10 = vld [vmem:[#allocation5 + $0x34] ss:$8 sps:$4 sm:$0xff]  }
  0x6d   : > { %589 = vmatprep.subr.bf16.mxu1 %v879_v7  ;;  %v884_v11 = vld [vmem:[#allocation7 + $0x10] ss:$8 sps:$4 sm:$0xff]   ;;  %v885_v13 = vld [vmem:[#allocation7 + $0x24] ss:$8 sps:$4 sm:$0xff]   ;;  %v887_v15 = vld [vmem:[#allocation7 + $0x20] ss:$8 sps:$4 sm:$0xff]  }
  0x6e   : > { %590 = vmatpush1.bf16.msra.mxu1 %v881_v8  ;;  %v878_v12 = vld [vmem:[#allocation5 + $0x30] ss:$8 sps:$4 sm:$0xff]   ;;  %v888_v17 = vld [vmem:[#allocation7 + $0x34] ss:$8 sps:$4 sm:$0xff]   ;;  %vm332_vm0 = vcmask 523264   ;;  %v283_v44 = vshrl.u32 %v282_v43, 7 }
  0x6f   : > { %339 = vmatpush1.bf16.msra.mxu0 %v872_v4  ;;  %591 = vmatprep.subr.bf16.mxu1 %v882_v9  ;;  %v890_v18 = vld [vmem:[#allocation7 + $0x30] ss:$8 sps:$4 sm:$0xff]   ;;  %v891_v19 = vld [vmem:[#allocation7 + $0x44] ss:$8 sps:$4 sm:$0xff]   ;;  %v893_v20 = vld [vmem:[#allocation7 + $0x40] ss:$8 sps:$4 sm:$0xff]  }
  0x70   : > { %340 = vmatprep.subr.bf16.mxu0 %v873_v5  ;;  %v894_v21 = vld [vmem:[#allocation7 + $0x54] ss:$8 sps:$4 sm:$0xff]   ;;  %v896_v22 = vld [vmem:[#allocation7 + $0x50] ss:$8 sps:$4 sm:$0xff]   ;;  %v897_v23 = vld [vmem:[#allocation7 + $0x64] ss:$8 sps:$4 sm:$0xff]  }
  0x71   : > { %v899_v24 = vld [vmem:[#allocation7 + $0x60] ss:$8 sps:$4 sm:$0xff]   ;;  %v900_v25 = vld [vmem:[#allocation7 + $0x74] ss:$8 sps:$4 sm:$0xff]   ;;  %v902_v26 = vld [vmem:[#allocation7 + $0x70] ss:$8 sps:$4 sm:$0xff]  }
  0x72   : > { %592 = vmatpush1.bf16.msra.mxu1 %v884_v11  ;;  %v903_v27 = vld [vmem:[#allocation7 + $0x84] ss:$8 sps:$4 sm:$0xff]   ;;  %v905_v28 = vld [vmem:[#allocation7 + $0x80] ss:$8 sps:$4 sm:$0xff]   ;;  %v906_v29 = vld [vmem:[#allocation7 + $0x94] ss:$8 sps:$4 sm:$0xff]  }
  0x73   : > { %341 = vmatpush1.bf16.msra.mxu0 %v875_v6  ;;  %593 = vmatprep.subr.bf16.mxu1 %v885_v13  ;;  %v908_v30 = vld [vmem:[#allocation7 + $0x90] ss:$8 sps:$4 sm:$0xff]   ;;  %v909_v31 = vld [vmem:[#allocation7 + $0xa4] ss:$8 sps:$4 sm:$0xff]   ;;  %v911_v32 = vld [vmem:[#allocation7 + $0xa0] ss:$8 sps:$4 sm:$0xff]  }
  0x74   : > { %342 = vmatprep.subr.bf16.mxu0 %v876_v10  ;;  %v912_v33 = vld [vmem:[#allocation7 + $0xb4] ss:$8 sps:$4 sm:$0xff]   ;;  %v914_v34 = vld [vmem:[#allocation7 + $0xb0] ss:$8 sps:$4 sm:$0xff]   ;;  %v915_v35 = vld [vmem:[#allocation7 + $0xc4] ss:$8 sps:$4 sm:$0xff]  }
  0x75   : > { %v917_v36 = vld [vmem:[#allocation7 + $0xc0] ss:$8 sps:$4 sm:$0xff]   ;;  %v918_v37 = vld [vmem:[#allocation7 + $0xd4] ss:$8 sps:$4 sm:$0xff]   ;;  %v920_v38 = vld [vmem:[#allocation7 + $0xd0] ss:$8 sps:$4 sm:$0xff]  }
  0x76   : > { %594 = vmatpush1.bf16.msra.mxu1 %v887_v15  ;;  %v921_v39 = vld [vmem:[#allocation7 + $0xe4] ss:$8 sps:$4 sm:$0xff]   ;;  %v923_v40 = vld [vmem:[#allocation7 + $0xe0] ss:$8 sps:$4 sm:$0xff]   ;;  %v924_v41 = vld [vmem:[#allocation7 + $0xf4] ss:$8 sps:$4 sm:$0xff]  }
  0x77   : > { %343 = vmatpush1.bf16.msra.mxu0 %v878_v12  ;;  %595 = vmatprep.subr.bf16.mxu1 %v888_v17  ;;  %v926_v42 = vld [vmem:[#allocation7 + $0xf0] ss:$8 sps:$4 sm:$0xff]   ;;  %v284_v45 = vsub.s32 0, %v283_v44  ;;  %v288_v47 = vsub.s32 1, %v283_v44  ;;  %s749_s11 = sshll.u32 %s1295_s12, 4  ;;  %s796_s28 = sshll.u32 %s1147_s22, 8 }
  0x78   : > { %v280_v46 = vld [vmem:[%s1364_s2] sm:$0x3]  ;;  %s268_s7 = scalar_lea.vmem [#allocation8], %s749_s11  ;;  %s1318_s16 = scalar_lea.hbm %s1367_s5, %s796_s28 }
  0x79   : > { %v285_v48 = vrot.slane %v280_v46, %v284_v45  ;;  %v289_v49 = vrot.slane %v280_v46, %v288_v47  ;;  %v417_v62 = vld [vmem:[%s1366_s4] sm:$0x3]  ;;  %s649_s6 = sshll.u32 %s268_s7, 4  ;;  %s635_s9 = scalar_lea.sflag [#allocation4], %s1295_s12  ;;  %s1320_s6 = int_to_ptr.vmem [resolvable:$true] %s649_s6 }
  0x7a   : > { %758 = vmatmul.mubr.msk.bf16.vlgmr.msra.gmra.mrb[0].mxu0 %vm332_vm0, %v271_v16  ;;  %596 = vmatpush1.bf16.msra.mxu1 %v890_v18  ;;  %v422_v63 = vrot.slane %v417_v62, %v284_v45  ;;  %v426_v0 = vrot.slane %v417_v62, %v288_v47  ;;  %s1017_s13 = scalar_lea.vmem %s1320_s6, 256  ;;  %p1381_p0 = scmp.ne.s32.totalorder %s1376_s23, 0 }
  0x7b   : > { %597 = vmatprep.subr.bf16.mxu1 %v891_v19  ;;  %p1018_p8 = scmp.ne.s32.totalorder %s1320_s6, %s1017_s13  ;;  %s1095_s22 = smov [#allocation8]  }
  0x7c   : > { %s1021_s29 = sshll.u32 %s1095_s22, 4  ;;  %s1022_s29 = int_to_ptr.vmem [resolvable:$false] %s1021_s29 }
  0x7d   : > { %p1019_p1 = pnand %p1018_p8, %p1381_p0  ;;  %s1023_s17 = scalar_lea.vmem %s1022_s29, 512 }
  0x7e   : > { %598 = vmatpush1.bf16.msra.mxu1 %v893_v20  ;;  %p1024_p7 = scmp.lt.s32.totalorder %s1320_s6, %s1022_s29  ;;  %p1025_p9 = scmp.lt.s32.totalorder %s1023_s17, %s1017_s13 }
  0x7f   : > { %599 = vmatprep.subr.bf16.mxu1 %v894_v21  ;;  %p1020_p3 = pneg %p1019_p1 }
  0x80   : > { %p1026_p12 = por %p1025_p9, %p1024_p7 }
  0x82   : > { %600 = vmatpush1.bf16.msra.mxu1 %v896_v22  ;;  %p1027_p2 = pnand %p1026_p12, %p1020_p3 }
  0x83   : > { %601 = vmatprep.subr.bf16.mxu1 %v897_v23 }
  0x86   : > { %602 = vmatpush1.bf16.msra.mxu1 %v899_v24 }
  0x87   : > { %603 = vmatprep.subr.bf16.mxu1 %v900_v25 }
  0x8a   : > { %604 = vmatpush1.bf16.msra.mxu1 %v902_v26 }
  0x8b   : > { %605 = vmatprep.subr.bf16.mxu1 %v903_v27 }
  0x8e   : > { %606 = vmatpush1.bf16.msra.mxu1 %v905_v28 }
  0x8f   : > { %607 = vmatprep.subr.bf16.mxu1 %v906_v29 }
  0x92   : > { %608 = vmatpush1.bf16.msra.mxu1 %v908_v30 }
  0x93   : > { %609 = vmatprep.subr.bf16.mxu1 %v909_v31 }
  0x96   : > { %610 = vmatpush1.bf16.msra.mxu1 %v911_v32 }
  0x97   : > { %611 = vmatprep.subr.bf16.mxu1 %v912_v33 }
  0x9a   : > { %612 = vmatpush1.bf16.msra.mxu1 %v914_v34 }
  0x9b   : > { %613 = vmatprep.subr.bf16.mxu1 %v915_v35 }
  0x9e   : > { %614 = vmatpush1.bf16.msra.mxu1 %v917_v36 }
  0x9f   : > { %615 = vmatprep.subr.bf16.mxu1 %v918_v37 }
  0xa2   : > { %616 = vmatpush1.bf16.msra.mxu1 %v920_v38 }
  0xa3   : > { %617 = vmatprep.subr.bf16.mxu1 %v921_v39 }
  0xa6   : > { %618 = vmatpush1.bf16.msra.mxu1 %v923_v40 }
  0xa7   : > { %619 = vmatprep.subr.bf16.mxu1 %v924_v41 }
  0xaa   : > { %620 = vmatpush1.bf16.msra.mxu1 %v926_v42 }
 0x14d   : > { %v370_v50 = vpop.f32.mrb[0].mxu0 }
 0x14e   : > { %v371_v51 = vadd.f32 %v370_v50, %v285_v48  ;;  %v372_v52 = vpop.f32.mrb[1].mxu0 }
 0x14f   : > { %v373_v53 = vadd.f32 %v372_v52, %v289_v49  ;;  %v374_v54 = vpop.f32.mrb[2].mxu0 }
 0x150   : > { %vm377_vm1 = vcmp.gt.f32.partialorder %v371_v51, 0.0  ;;  %v379_v55 = vmul.f32 0.01, %v371_v51  ;;  %v375_v56 = vpop.f32.mrb[3].mxu0 }
 0x151   : > { %vm378_vm2 = vcmp.gt.f32.partialorder %v373_v53, 0.0  ;;  %v380_v57 = vmul.f32 0.01, %v373_v53 }
 0x152   : > { %v381_v58 = vsel %vm377_vm1, %v371_v51, %v379_v55 }
 0x153   : > { %v382_v59 = vsel %vm378_vm2, %v373_v53, %v380_v57  ;;  %v383_v61 = vpack.c.bf16 %v381_v58, %v381_v58 }
 0x154   : > { %v384_v60 = vpack.c.bf16 %v382_v59, %v382_v59 }
 0x156   : > { %621 = vmatprep.mubr.bf16.mxu1 %v384_v60 }
 0x157   : > { %622 = vmatmul.mubr.bf16.vlgmr.msra.gmra.mrb[0].mxu1 %v383_v61 }
 0x22a   : > { %v623_v1 = vpop.f32.mrb[0].mxu1 }
 0x22b   : > { %v624_v2 = vadd.f32 %v623_v1, %v422_v63  ;;  %v625_v3 = vpop.f32.mrb[1].mxu1 }
 0x22c   : > { %v626_v4 = vadd.f32 %v625_v3, %v426_v0  ;;  %v627_v5 = vpop.f32.mrb[2].mxu1 }
 0x22d   : > { %927 = vtanh.f32 %v624_v2  ;;  %v628_v6 = vpop.f32.mrb[3].mxu1 }
 0x22e   : > { %929 = vtanh.f32 %v626_v4 }
 0x237   : > { %v928_v7 = vpop.eup %927 }
 0x238   : > { %v930_v8 = vpop.eup %929  ;;  %632 = vst [vmem:[%s268_s7] sm:$0xff] %v928_v7 }
 0x239   : > { %633 = vst [vmem:[%s268_s7 + $0x8] sm:$0xff] %v930_v8 }
 0x23a   : > { %1030 = shalt.err (!%p1027_p2)
}
 0x23b   : > { %s1031_s12 = scalar_lea.hbm %s1318_s16, 256  ;;  %s1035_s8 = scalar_lea.hbm %s1367_s5, 512 }
 0x23c   : > { %p1032_p13 = scmp.ne.s32.totalorder %s1318_s16, %s1031_s12  ;;  %p1036_p4 = scmp.lt.u32.totalorder %s1318_s16, %s1367_s5 }
 0x23d   : > { %p1037_p5 = scmp.lt.u32.totalorder %s1035_s8, %s1031_s12  ;;  %p1039_p8 = scmp.lt.u32.totalorder %s1031_s12, %s1318_s16 }
 0x23e   : > { %p1033_p6 = pnand %p1032_p13, %p1381_p0 }
 0x23f   : > { %p1038_p11 = por %p1037_p5, %p1036_p4 }
 0x240   : > { %p1034_p10 = pneg %p1033_p6 }
 0x241   : > { %p1040_p1 = por %p1039_p8, %p1038_p11 }
 0x243   : > { %p1041_p3 = pnand %p1040_p1, %p1034_p10 }
 0x245   : > { %1044 = shalt.err (!%p1041_p3)
}
 0x246   : > { %807 = dma.vmem_to_hbm [thread:$0]  (%p1381_p0), %s1320_s6, 256, %s1318_s16, %s635_s9  }
 0x247 PF: > { %s661_s28 = sand.u32 1, %s1075_s18   ;;  %p1382_p7 = scmp.ne.s32.totalorder %s1372_s25, 0 }
 0x248   : > { %p1383_p9 = scmp.ge.s32.totalorder %s1087_s21, 2  ;;  %s662_s7 = scalar_lea.sflag [#allocation4], %s661_s28 }
 0x24a   : > { %p821_p12 = pnand %p1383_p9, %p1382_p7 }
 0x24c   : > { %1070 = dma.done.wait (!%p821_p12), %s662_s7, 256  }
 0x24d   : > { %1072 = vsyncadd (!%p821_p12), %s662_s7, 4294967040  ;;  %p19_p2 = scmp.ge.s32.totalorder %s1236_s14, 4   ;;  %s1384_s18 = smov %s1079_s19 }
 0x24e   : > { %s1385_s19 = smov %s1083_s20  ;;  %s1386_s20 = smov %s1252_s27 }
 0x24f   : > { %s1387_s21 = smov %s1236_s14  ;;  %21 = sbr.rel (!%p19_p2) target bundleno = 6 (0x6), region = 93 }
 0x256   :  { %667 = vsyncpa [#allocation3], 1 }
 0x257   :  { %669 = vsyncpa [#allocation3 + $0x1], 1 }
 0x258   :  { %670 = vsyncpa [#allocation6], 1 }
 0x259   :  { %671 = vsyncpa [#allocation4], 1 }
 0x25a   :  { %673 = vsyncpa [#allocation4 + $0x1], 1 }

</bundles_post_ra>
